<compile_context>
chip_gen: v5e
topology: v5e:2x2
jax: 0.10.0
libtpu: 0.0.40
codegen_flags: <defaults>
</compile_context>

<pallas_src>
import functools

import jax
import jax.numpy as jnp
from jax import lax
from jax.experimental import pallas as pl
from jax.experimental.pallas import tpu as pltpu


def _round_up(x: int, m: int) -> int:
    return (x + m - 1) // m * m


def answer_mask_kernel(q_ref, w_ref, b_ref, o_ref):
    # q_ref: (tm, K)   w_ref: (num_ans_p, K)   b_ref: (1, num_ans_p)
    # o_ref: (tm, num_ans_p)
    logits = lax.dot_general(
        q_ref[...],
        w_ref[...],
        dimension_numbers=(((1,), (1,)), ((), ())),  # contract K of both -> q @ W^T
        preferred_element_type=jnp.float32,
    )
    logits = logits + b_ref[...]
    # softplus(x) = log(1 + exp(x)), numerically stable via logaddexp.
    sp = jnp.logaddexp(jnp.float32(0.0), logits)
    # clamp(max=1.0)
    o_ref[...] = jnp.minimum(sp, jnp.float32(1.0)).astype(o_ref.dtype)


@functools.partial(jax.jit, static_argnames=("tm", "out_dtype", "vmem_limit_bytes"))
def answer_mask(q, weight, bias, *, tm=256, out_dtype=None, vmem_limit_bytes=None):
    """AnswerMask forward.

    q:      [B, num_hid]
    weight: [num_ans, num_hid]   (PyTorch nn.Linear layout, NOT pre-transposed)
    bias:   [num_ans]
    returns [B, num_ans]
    """
    B, num_hid = q.shape
    num_ans, num_hid_w = weight.shape
    assert num_hid_w == num_hid
    out_dtype = out_dtype or q.dtype

    # Pad the answer dimension to a lane multiple and the batch to the tile.
    num_ans_p = _round_up(num_ans, 128)
    tm = min(tm, _round_up(B, 8))          # don't over-tile tiny batches
    B_p = _round_up(B, tm)

    q_p = q if B_p == B else jnp.pad(q, ((0, B_p - B), (0, 0)))
    w_p = (weight if num_ans_p == num_ans
           else jnp.pad(weight, ((0, num_ans_p - num_ans), (0, 0))))
    b_p = bias if num_ans_p == num_ans else jnp.pad(bias, (0, num_ans_p - num_ans))
    b2 = b_p.reshape(1, num_ans_p)

    # Explicit VMEM budget: resident W + bias, plus double-buffered q / out tiles.
    itemsize_in = jnp.dtype(q.dtype).itemsize
    itemsize_out = jnp.dtype(out_dtype).itemsize
    resident = num_ans_p * num_hid * jnp.dtype(weight.dtype).itemsize + num_ans_p * 4
    streamed = 2 * (tm * num_hid * itemsize_in + tm * num_ans_p * itemsize_out)
    if vmem_limit_bytes is None:
        # 2x headroom, clamped to >= default scoped and <= v7x-safe (64 MiB/TC).
        vmem_limit_bytes = min(max(2 * (resident + streamed), 32 << 20), 56 << 20)

    grid = (B_p // tm,)
    out = pl.pallas_call(
        answer_mask_kernel,
        out_shape=jax.ShapeDtypeStruct((B_p, num_ans_p), out_dtype),
        grid_spec=pltpu.PrefetchScalarGridSpec(
            num_scalar_prefetch=0,
            grid=grid,
            in_specs=[
                pl.BlockSpec((tm, num_hid), lambda i: (i, 0)),        # stream q
                pl.BlockSpec((num_ans_p, num_hid), lambda i: (0, 0)),  # resident W
                pl.BlockSpec((1, num_ans_p), lambda i: (0, 0)),        # resident bias
            ],
            out_specs=pl.BlockSpec((tm, num_ans_p), lambda i: (i, 0)),
        ),
        compiler_params=pltpu.CompilerParams(
            dimension_semantics=("parallel",),
            vmem_limit_bytes=int(vmem_limit_bytes),
        ),
    )(q_p, w_p, b2)

    return out[:B, :num_ans]


if __name__ == "__main__":
    # Small shapes consistent with the module; num_ans deliberately NOT a
    # multiple of 128 to exercise the padding path (real VQA vocab is 3129).
    num_hid = 32
    num_ans = 200
    batch = 8

    key = jax.random.PRNGKey(0)
    kq, kw, kb = jax.random.split(key, 3)

    q = jax.random.normal(kq, (batch, num_hid), dtype=jnp.float32)
    bound = 1.0 / jnp.sqrt(num_hid)
    weight = jax.random.uniform(kw, (num_ans, num_hid), jnp.float32, -bound, bound)
    bias = jax.random.uniform(kb, (num_ans,), jnp.float32, -bound, bound)

    out = answer_mask(q, weight, bias)
    out = jax.block_until_ready(out)

    # Pure-JAX reference (dropout is identity at inference).
    ref = jnp.minimum(jax.nn.softplus(q @ weight.T + bias), 1.0)
    assert out.shape == (batch, num_ans)
    assert jnp.allclose(out, ref, atol=1e-5, rtol=1e-5)

    print("KERNEL_OK")
</pallas_src>

<mosaic_0001>
module attributes {stable_mosaic.version = 11 : i64} {
  func.func @answer_mask_kernel(%arg0: i32, %arg1: memref<8x32xf32, #tpu.memory_space<vmem>>, %arg2: memref<256x32xf32, #tpu.memory_space<vmem>>, %arg3: memref<1x256xf32, #tpu.memory_space<vmem>>, %arg4: memref<8x256xf32, #tpu.memory_space<vmem>>) attributes {dimension_semantics = [#tpu.dimension_semantics<parallel>], iteration_bounds = array<i64: 1>, scalar_prefetch = 0 : i64, scratch_operands = 0 : i64, tpu.core_type = #tpu.core_type<tc>, window_params = [{transform_indices = @transform_0, window_bounds = array<i64: 8, 32>}, {pipeline_mode = #tpu.pipeline_mode<synchronous>, transform_indices = @transform_1, window_bounds = array<i64: 256, 32>}, {pipeline_mode = #tpu.pipeline_mode<synchronous>, transform_indices = @transform_2, window_bounds = array<i64: 1, 256>}, {transform_indices = @transform_3, window_bounds = array<i64: 8, 256>}]} {
    %c0 = arith.constant 0 : index
    %c0_0 = arith.constant 0 : index
    %0 = vector.load %arg1[%c0, %c0_0] : memref<8x32xf32, #tpu.memory_space<vmem>>, vector<8x32xf32>
    %c0_1 = arith.constant 0 : index
    %c0_2 = arith.constant 0 : index
    %1 = vector.load %arg2[%c0_1, %c0_2] : memref<256x32xf32, #tpu.memory_space<vmem>>, vector<256x32xf32>
    %cst = arith.constant dense<0.000000e+00> : vector<8x256xf32>
    %2 = tpu.matmul %0, %1, %cst {dimension_numbers = #tpu.dot_dimension_numbers<[1], [1], [0], [0], [0, 0, 1, 0], [], []>} : vector<8x32xf32>, vector<256x32xf32>, vector<8x256xf32> -> vector<8x256xf32>
    %c0_3 = arith.constant 0 : index
    %c0_4 = arith.constant 0 : index
    %3 = vector.load %arg3[%c0_3, %c0_4] : memref<1x256xf32, #tpu.memory_space<vmem>>, vector<1x256xf32>
    %4 = vector.broadcast %3 : vector<1x256xf32> to vector<8x256xf32>
    %5 = arith.addf %2, %4 : vector<8x256xf32>
    %cst_5 = arith.constant 0.000000e+00 : f32
    %6 = vector.broadcast %cst_5 : f32 to vector<8x256xf32>
    %7 = arith.maximumf %6, %5 : vector<8x256xf32>
    %8 = vector.broadcast %cst_5 : f32 to vector<8x256xf32>
    %9 = arith.subf %8, %5 : vector<8x256xf32>
    %10 = arith.cmpf one, %9, %9 : vector<8x256xf32>
    %11 = vector.broadcast %cst_5 : f32 to vector<8x256xf32>
    %12 = arith.addf %11, %5 : vector<8x256xf32>
    %13 = math.absf %9 : vector<8x256xf32>
    %cst_6 = arith.constant 0.000000e+00 : f32
    %14 = vector.broadcast %cst_6 : f32 to vector<8x256xf32>
    %15 = arith.subf %14, %13 : vector<8x256xf32>
    %16 = math.exp %15 : vector<8x256xf32>
    %17 = math.log1p %16 : vector<8x256xf32>
    %18 = arith.addf %7, %17 : vector<8x256xf32>
    %19 = arith.select %10, %12, %18 : vector<8x256xi1>, vector<8x256xf32>
    %cst_7 = arith.constant 1.000000e+00 : f32
    %20 = vector.broadcast %cst_7 : f32 to vector<8x256xf32>
    %21 = arith.minimumf %19, %20 : vector<8x256xf32>
    %c0_8 = arith.constant 0 : index
    %c0_9 = arith.constant 0 : index
    %22 = vector.load %arg4[%c0_8, %c0_9] : memref<8x256xf32, #tpu.memory_space<vmem>>, vector<8x256xf32>
    tpu.vector_store %arg4[%c0_8, %c0_9], %21 {strides = array<i32>} : memref<8x256xf32, #tpu.memory_space<vmem>>, vector<8x256xf32>,
    return
  }
  func.func @transform_0(%arg0: i32) -> (i32, i32) {
    %c0_i32 = arith.constant 0 : i32
    %c0_i32_0 = arith.constant 0 : i32
    return %arg0, %c0_i32 : i32, i32
  }
  func.func @transform_1(%arg0: i32) -> (i32, i32) {
    %c0_i32 = arith.constant 0 : i32
    %c0_i32_0 = arith.constant 0 : i32
    %c0_i32_1 = arith.constant 0 : i32
    return %c0_i32, %c0_i32_0 : i32, i32
  }
  func.func @transform_2(%arg0: i32) -> (i32, i32) {
    %c0_i32 = arith.constant 0 : i32
    %c0_i32_0 = arith.constant 0 : i32
    %c0_i32_1 = arith.constant 0 : i32
    return %c0_i32, %c0_i32_0 : i32, i32
  }
  func.func @transform_3(%arg0: i32) -> (i32, i32) {
    %c0_i32 = arith.constant 0 : i32
    %c0_i32_0 = arith.constant 0 : i32
    return %arg0, %c0_i32 : i32, i32
  }
}

</mosaic_0001>

<bundles_post_ra>
// kernel: answer_mask.1
= control target key start
LH: loop header
LB: loop body
LE: loop exit
PB: predicated region body
PF: predicated region fallthrough
CT: control target
= control target key end

     0   :  { %vm54_vm0 = vcmask 261120   ;;  %s481_s0 = inlined_call_operand.vmem [shape: f32[8,32], index: 0, kind: input, shape index: {}]   ;;  %s482_s1 = inlined_call_operand.vmem [shape: f32[256,32], index: 1, kind: input, shape index: {}]   ;;  %s483_s2 = inlined_call_operand.vmem [shape: f32[1,256], index: 2, kind: input, shape index: {}]   ;;  %s484_s3 = inlined_call_operand.hbm [shape: f32[8,256], index: 3, kind: output, shape index: {}]  }
   0x1   :  { %v31_v0 = vld [vmem:[%s482_s1 + $0x78] sm:$0xff]  ;;  %v30_v2 = vld [vmem:[%s482_s1 + $0x70] sm:$0xff]  ;;  %v29_v4 = vld [vmem:[%s482_s1 + $0x68] sm:$0xff] }
   0x2   :  { %v47_v1 = vld [vmem:[%s482_s1 + $0xf8] sm:$0xff]  ;;  %252 = vmatpush.xpose.msk.msra.mxu0 %vm54_vm0, %v31_v0  ;;  %v46_v3 = vld [vmem:[%s482_s1 + $0xf0] sm:$0xff]  ;;  %v45_v5 = vld [vmem:[%s482_s1 + $0xe8] sm:$0xff] }
   0x3   :  { %269 = vmatpush.xpose.msk.msra.mxu1 %vm54_vm0, %v47_v1 }
   0x6   :  { %253 = vmatpush.xpose.msk.msra.mxu0 %vm54_vm0, %v30_v2 }
   0x7   :  { %270 = vmatpush.xpose.msk.msra.mxu1 %vm54_vm0, %v46_v3 }
   0x8   :  { %8 = vsyncpa [#allocation3], 0  ;;  %v28_v6 = vld [vmem:[%s482_s1 + $0x60] sm:$0xff]  ;;  %v27_v8 = vld [vmem:[%s482_s1 + $0x58] sm:$0xff]  ;;  %s243_s27 = sshll.u32 %s484_s3, 4  ;;  %s244_s27 = int_to_ptr.hbm [resolvable:$true] %s243_s27 }
   0x9   :  { %v44_v7 = vld [vmem:[%s482_s1 + $0xe0] sm:$0xff]  ;;  %v43_v9 = vld [vmem:[%s482_s1 + $0xd8] sm:$0xff]  ;;  %v26_v10 = vld [vmem:[%s482_s1 + $0x50] sm:$0xff] }
   0xa   :  { %254 = vmatpush.xpose.msk.msra.mxu0 %vm54_vm0, %v29_v4  ;;  %v42_v11 = vld [vmem:[%s482_s1 + $0xd0] sm:$0xff]  ;;  %v25_v12 = vld [vmem:[%s482_s1 + $0x48] sm:$0xff]  ;;  %v24_v14 = vld [vmem:[%s482_s1 + $0x40] sm:$0xff] }
   0xb   :  { %271 = vmatpush.xpose.msk.msra.mxu1 %vm54_vm0, %v45_v5  ;;  %v41_v13 = vld [vmem:[%s482_s1 + $0xc8] sm:$0xff]  ;;  %v40_v15 = vld [vmem:[%s482_s1 + $0xc0] sm:$0xff]  ;;  %v23_v16 = vld [vmem:[%s482_s1 + $0x38] sm:$0xff] }
   0xc   :  { %v39_v17 = vld [vmem:[%s482_s1 + $0xb8] sm:$0xff]  ;;  %v22_v18 = vld [vmem:[%s482_s1 + $0x30] sm:$0xff]  ;;  %v21_v20 = vld [vmem:[%s482_s1 + $0x28] sm:$0xff] }
   0xd   :  { %v38_v19 = vld [vmem:[%s482_s1 + $0xb0] sm:$0xff]  ;;  %v37_v21 = vld [vmem:[%s482_s1 + $0xa8] sm:$0xff]  ;;  %v20_v22 = vld [vmem:[%s482_s1 + $0x20] sm:$0xff] }
   0xe   :  { %255 = vmatpush.xpose.msk.msra.mxu0 %vm54_vm0, %v28_v6  ;;  %v36_v23 = vld [vmem:[%s482_s1 + $0xa0] sm:$0xff]  ;;  %v19_v24 = vld [vmem:[%s482_s1 + $0x18] sm:$0xff]  ;;  %v18_v26 = vld [vmem:[%s482_s1 + $0x10] sm:$0xff] }
   0xf   :  { %272 = vmatpush.xpose.msk.msra.mxu1 %vm54_vm0, %v44_v7  ;;  %v35_v25 = vld [vmem:[%s482_s1 + $0x98] sm:$0xff]  ;;  %v34_v27 = vld [vmem:[%s482_s1 + $0x90] sm:$0xff]  ;;  %v17_v28 = vld [vmem:[%s482_s1 + $0x8] sm:$0xff] }
  0x10   :  { %v33_v29 = vld [vmem:[%s482_s1 + $0x88] sm:$0xff]  ;;  %v16_v30 = vld [vmem:[%s482_s1] sm:$0xff] }
  0x11   :  { %v32_v31 = vld [vmem:[%s482_s1 + $0x80] sm:$0xff] }
  0x12   :  { %256 = vmatpush.xpose.msk.msra.mxu0 %vm54_vm0, %v27_v8  ;;  %v15_v32 = vld [vmem:[%s481_s0] sm:$0xff]  ;;  %s321_s0 = smov [#allocation2]  }
  0x13   :  { %273 = vmatpush.xpose.msk.msra.mxu1 %vm54_vm0, %v43_v9  ;;  %v48_v33 = vld [vmem:[%s483_s2] sm:$0x3]  ;;  %s241_s1 = sshll.u32 %s321_s0, 4  ;;  %s242_s1 = int_to_ptr.vmem [resolvable:$true] %s241_s1 }
  0x14   :  { %v50_v34 = vperm.slane %v48_v33, 0  ;;  %v51_v35 = vperm.slane %v48_v33, 1 }
  0x16   :  { %257 = vmatpush.xpose.msk.msra.mxu0 %vm54_vm0, %v26_v10 }
  0x17   :  { %274 = vmatpush.xpose.msk.msra.mxu1 %vm54_vm0, %v42_v11 }
  0x1a   :  { %258 = vmatpush.xpose.msk.msra.mxu0 %vm54_vm0, %v25_v12 }
  0x1b   :  { %275 = vmatpush.xpose.msk.msra.mxu1 %vm54_vm0, %v41_v13 }
  0x1e   :  { %259 = vmatpush.xpose.msk.msra.mxu0 %vm54_vm0, %v24_v14 }
  0x1f   :  { %276 = vmatpush.xpose.msk.msra.mxu1 %vm54_vm0, %v40_v15 }
  0x22   :  { %260 = vmatpush.xpose.msk.msra.mxu0 %vm54_vm0, %v23_v16 }
  0x23   :  { %277 = vmatpush.xpose.msk.msra.mxu1 %vm54_vm0, %v39_v17 }
  0x26   :  { %261 = vmatpush.xpose.msk.msra.mxu0 %vm54_vm0, %v22_v18 }
  0x27   :  { %278 = vmatpush.xpose.msk.msra.mxu1 %vm54_vm0, %v38_v19 }
  0x2a   :  { %262 = vmatpush.xpose.msk.msra.mxu0 %vm54_vm0, %v21_v20 }
  0x2b   :  { %279 = vmatpush.xpose.msk.msra.mxu1 %vm54_vm0, %v37_v21 }
  0x2e   :  { %263 = vmatpush.xpose.msk.msra.mxu0 %vm54_vm0, %v20_v22 }
  0x2f   :  { %280 = vmatpush.xpose.msk.msra.mxu1 %vm54_vm0, %v36_v23 }
  0x32   :  { %264 = vmatpush.xpose.msk.msra.mxu0 %vm54_vm0, %v19_v24 }
  0x33   :  { %281 = vmatpush.xpose.msk.msra.mxu1 %vm54_vm0, %v35_v25 }
  0x36   :  { %265 = vmatpush.xpose.msk.msra.mxu0 %vm54_vm0, %v18_v26 }
  0x37   :  { %282 = vmatpush.xpose.msk.msra.mxu1 %vm54_vm0, %v34_v27 }
  0x3a   :  { %266 = vmatpush.xpose.msk.msra.mxu0 %vm54_vm0, %v17_v28 }
  0x3b   :  { %283 = vmatpush.xpose.msk.msra.mxu1 %vm54_vm0, %v33_v29 }
  0x3e   :  { %267 = vmatpush.xpose.msk.msra.mxu0 %vm54_vm0, %v16_v30 }
  0x3f   :  { %284 = vmatpush.xpose.msk.msra.mxu1 %vm54_vm0, %v32_v31 }
  0x41   :  { %268 = vmatmul.msk.f32.vlgmr.msra.gmra.mxu0 %vm54_vm0, %v15_v32 }
  0x42   :  { %285 = vmatmul.msk.f32.vlgmr.msra.gmra.mxu1 %vm54_vm0, %v15_v32 }
  0xbe   :  { %v171_v36 = vpop.f32.mrf.mxu0 }
  0xbf   :  { %v191_v37 = vpop.f32.mrf.mxu1  ;;  %v172_v38 = vadd.f32 %v171_v36, %v50_v34 }
  0xc0   :  { %v192_v39 = vadd.f32 %v191_v37, %v51_v35 }
  0xc1   :  { %v196_v40 = vsub.f32 0.0, %v172_v38  ;;  %v194_v62 = vmax.f32 %v172_v38, 0.0 }
  0xc2   :  { %v197_v41 = vsub.f32 0.0, %v192_v39  ;;  %v195_v2 = vmax.f32 %v192_v39, 0.0 }
  0xc3   :  { %v202_v42 = vand.u32 2147483647, %v196_v40  ;;  %vm198_vm3 = vcmp.ne.f32.partialorder %v196_v40, %v196_v40 }
  0xc4   :  { %v203_v43 = vand.u32 2147483647, %v197_v41  ;;  %vm199_vm4 = vcmp.ne.f32.partialorder %v197_v41, %v197_v41 }
  0xc5   :  { %v204_v44 = vsub.f32 0.0, %v202_v42 }
  0xc6   :  { %v205_v45 = vsub.f32 0.0, %v203_v43 }
  0xc7   :  { %v206_v46 = vmul.f32 1.442695, %v204_v44 }
  0xc8   :  { %v208_v47 = vmul.f32 1.442695, %v205_v45 }
  0xc9   :  { %287 = vpow2.f32 %v206_v46 }
  0xca   :  { %289 = vpow2.f32 %v208_v47 }
  0xcf   :  { %v288_v48 = vpop.eup %287 }
  0xd0   :  { %v290_v49 = vpop.eup %289  ;;  %v210_v50 = vadd.f32 1.0, %v288_v48  ;;  %v213_v51 = vmul.f32 -0.5, %v288_v48  ;;  %v216_v55 = vand.u32 2147483647, %v288_v48 }
  0xd1   :  { %v219_v52 = vadd.f32 1.0, %v290_v49  ;;  %v222_v53 = vmul.f32 -0.5, %v290_v49  ;;  %v225_v57 = vand.u32 2147483647, %v290_v49 }
  0xd2   :  { %291 = vlog2.f32 %v210_v50  ;;  %v214_v54 = vadd.f32 1.0, %v213_v51  ;;  %vm217_vm1 = vcmp.lt.f32.partialorder %v216_v55, 0.0004427343 }
  0xd3   :  { %293 = vlog2.f32 %v219_v52  ;;  %v223_v56 = vadd.f32 1.0, %v222_v53  ;;  %vm226_vm2 = vcmp.lt.f32.partialorder %v225_v57, 0.0004427343 }
  0xd4   :  { %v215_v61 = vmul.f32 %v288_v48, %v214_v54 }
  0xd5   :  { %v224_v0 = vmul.f32 %v290_v49, %v223_v56 }
  0xd8   :  { %v292_v58 = vpop.eup %291 }
  0xd9   :  { %v294_v59 = vpop.eup %293  ;;  %v212_v60 = vmul.f32 0.6931472, %v292_v58 }
  0xda   :  { %v221_v63 = vmul.f32 0.6931472, %v294_v59 }
  0xdb   :  { %v218_v1 = vsel %vm217_vm1, %v215_v61, %v212_v60 }
  0xdc   :  { %v228_v3 = vadd.f32 %v218_v1, %v194_v62  ;;  %v227_v4 = vsel %vm226_vm2, %v224_v0, %v221_v63 }
  0xdd   :  { %v229_v5 = vadd.f32 %v227_v4, %v195_v2 }
  0xde   :  { %v230_v6 = vsel %vm198_vm3, %v172_v38, %v228_v3 }
  0xdf   :  { %v232_v7 = vmin.f32 %v230_v6, 1.0  ;;  %v231_v8 = vsel %vm199_vm4, %v192_v39, %v229_v5 }
  0xe0   :  { %v233_v9 = vmin.f32 %v231_v8, 1.0 }
  0xe1   :  { %234 = vst [vmem:[#allocation2] sm:$0xff] %v232_v7 }
  0xe2   :  { %235 = vst [vmem:[#allocation2 + $0x8] sm:$0xff] %v233_v9 }
  0xe3   :  { %246 = dma.vmem_to_hbm [thread:$0]  %s242_s1, 256, %s244_s27, [#allocation3]  }
  0xe4   :  { %319 = dma.done.wait [#allocation3], 256  }
  0xe5   :  { %320 = vsyncadd [#allocation3], 4294967040 }
  0xe6   :  { %251 = vsyncpa [#allocation3], 1 }

</bundles_post_ra>
